<compile_context>
chip_gen: v7x
topology: tpu7x:2x2x1
jax: 0.10.0
libtpu: 0.0.40
codegen_flags: <defaults>
</compile_context>

<pallas_src>
import jax
import jax.numpy as jnp
from jax import lax
from jax.experimental import pallas as pl
from jax.experimental.pallas import tpu as pltpu

C_IN, C_MID, C_OUT, K = 3, 64, 128, 3
TAPS = 2 * K - 1            # 5-tap receptive field of the fused conv1+conv2
ROWS_IN = TAPS * C_IN       # 15 im2col rows fed to the kernel
ROWS_MID = K * C_MID        # 192 stacked conv1 output rows


def _round_up(n, m):
    return ((n + m - 1) // m) * m


def conv_block1d_kernel(x15_ref, w1s_ref, b1s_ref, w2_ref, b2_ref, out_ref):
    # x15_ref: (15, TL)    5-tap im2col of the input, one lane-dense length tile
    # w1s_ref: (192, 15)   block-Toeplitz-stacked conv1 weight
    # b1s_ref: (192, 1)    conv1 bias tiled 3x
    # w2_ref:  (128, 192)  conv2 weight, im2col layout
    # b2_ref:  (128, 1)
    # out_ref: (128, TL)   lane-dense output tile (TL % 128 == 0)
    xw = x15_ref[...].astype(jnp.float32)

    # Fused conv1 (all three conv2 tap positions at once): one (192,15)@(15,TL)
    # MXU dot, then bias + ReLU on the VPU.
    h = jnp.dot(w1s_ref[...], xw, preferred_element_type=jnp.float32)
    h = jnp.maximum(h + b1s_ref[...], 0.0)                       # (192, TL)

    # conv2: a single 192-deep contraction, no in-kernel shifts/concat.
    o = jnp.dot(w2_ref[...], h, preferred_element_type=jnp.float32)
    o = jnp.maximum(o + b2_ref[...], 0.0)                        # (128, TL)

    out_ref[...] = o.astype(out_ref.dtype)


def conv_block1d(x, w1, b1, w2, b2, *, max_tile=2048):
    """x: (B, 3, L) float32; weights in PyTorch layout:
       w1 (64, 3, 3), b1 (64,), w2 (128, 64, 3), b2 (128,)."""
    B, cin, L = x.shape
    assert cin == C_IN and L >= TAPS
    L_out = L - (TAPS - 1)

    # Length tiling: lane-dense tiles (multiple of 128); ragged tail handled by
    # zero-padding the input and trimming the output after the kernel.
    TL = min(max_tile, _round_up(L_out, 128))
    L_out_pad = _round_up(L_out, TL)
    n_tiles = L_out_pad // TL
    L_pad = L_out_pad + (TAPS - 1)
    x_p = jnp.pad(x, ((0, 0), (0, 0), (0, L_pad - L))) if L_pad > L else x

    # Host-side 5-tap im2col of the tiny 3-channel input (pure layout
    # plumbing):  x15[b, tap*3 + ic, t] = x[b, ic, t + tap].
    x15 = jnp.concatenate(
        [x_p[:, :, tap:tap + L_out_pad] for tap in range(TAPS)], axis=1)

    # conv2 weight -> im2col layout: w2f[oc, k2*64 + c] = w2[oc, c, k2].
    w2_f = jnp.transpose(w2, (0, 2, 1)).reshape(C_OUT, K * C_MID)
    b2_c = b2.reshape(C_OUT, 1)

    # Block-Toeplitz-stacked conv1 weight (192, 15):
    #   w1s[k2*64 + c, (k2 + k)*3 + ic] = w1[c, ic, k], zero elsewhere,
    # so row (k2*64 + c) of w1s @ x15 yields h[c, t + k2].
    w1_im2col = jnp.transpose(w1, (0, 2, 1)).reshape(C_MID, K * C_IN)  # (64, 9)
    row_blocks = []
    for k2 in range(K):
        row_blocks.append(jnp.concatenate(
            [jnp.zeros((C_MID, C_IN * k2), w1.dtype),
             w1_im2col,
             jnp.zeros((C_MID, C_IN * (K - 1 - k2)), w1.dtype)], axis=1))
    w1_s = jnp.concatenate(row_blocks, axis=0)                   # (192, 15)
    b1_s = jnp.tile(b1, K).reshape(ROWS_MID, 1)                  # (192, 1)

    flops = 2 * (ROWS_MID * ROWS_IN + C_OUT * ROWS_MID) * L_out_pad * B
    bytes_accessed = 4 * (B * ROWS_IN * L_out_pad        # im2col'd input
                          + B * C_OUT * L_out_pad        # output
                          + ROWS_MID * ROWS_IN + ROWS_MID
                          + C_OUT * ROWS_MID + C_OUT)    # parameters

    out_pad = pl.pallas_call(
        conv_block1d_kernel,
        out_shape=jax.ShapeDtypeStruct((B, C_OUT, L_out_pad), x.dtype),
        grid_spec=pltpu.PrefetchScalarGridSpec(
            num_scalar_prefetch=0,
            grid=(B, n_tiles),
            in_specs=[
                # Per-(batch, tile) haloed im2col window: VMEM stays O(TL).
                pl.BlockSpec((None, ROWS_IN, TL), lambda b, t: (b, 0, t)),
                # Parameters: tiny, same block for every grid step.
                pl.BlockSpec((ROWS_MID, ROWS_IN), lambda b, t: (0, 0)),
                pl.BlockSpec((ROWS_MID, 1), lambda b, t: (0, 0)),
                pl.BlockSpec((C_OUT, ROWS_MID), lambda b, t: (0, 0)),
                pl.BlockSpec((C_OUT, 1), lambda b, t: (0, 0)),
            ],
            out_specs=pl.BlockSpec((None, C_OUT, TL), lambda b, t: (b, 0, t)),
        ),
        compiler_params=pltpu.CompilerParams(
            dimension_semantics=("parallel", "parallel"),
            # Per-tile footprint is a few MiB at TL=2048; 32 MiB leaves ample
            # headroom under v7x's 64 MiB physical VMEM.
            vmem_limit_bytes=32 * 1024 * 1024,
        ),
        cost_estimate=pl.CostEstimate(
            flops=flops, transcendentals=0, bytes_accessed=bytes_accessed),
    )(x15, w1_s, b1_s, w2_f, b2_c)

    return out_pad[:, :, :L_out]


def _reference(x, w1, b1, w2, b2):
    """Pure-JAX reference (lax.conv) for correctness checking."""
    y = lax.conv_general_dilated(x, w1, window_strides=(1,), padding="VALID",
                                 dimension_numbers=("NCH", "OIH", "NCH"))
    y = jnp.maximum(y + b1[None, :, None], 0.0)
    y = lax.conv_general_dilated(y, w2, window_strides=(1,), padding="VALID",
                                 dimension_numbers=("NCH", "OIH", "NCH"))
    return jnp.maximum(y + b2[None, :, None], 0.0)


if __name__ == "__main__":
    key = jax.random.PRNGKey(0)
    kx, k1, k2, k3, k4, kx2 = jax.random.split(key, 6)

    # Deterministic synthetic parameters (PyTorch shapes: OIW for weights).
    w1 = jax.random.normal(k1, (C_MID, C_IN, K), dtype=jnp.float32) * 0.1
    b1 = jax.random.normal(k2, (C_MID,), dtype=jnp.float32) * 0.1
    w2 = jax.random.normal(k3, (C_OUT, C_MID, K), dtype=jnp.float32) * 0.1
    b2 = jax.random.normal(k4, (C_OUT,), dtype=jnp.float32) * 0.1

    # Small shape implied by the module (B=2, C=3, L=16).
    B, L = 2, 16
    x = jax.random.normal(kx, (B, C_IN, L), dtype=jnp.float32)
    out = jax.block_until_ready(conv_block1d(x, w1, b1, w2, b2))
    ref = _reference(x, w1, b1, w2, b2)
    assert out.shape == (B, C_OUT, L - 4), out.shape
    # MXU default-precision f32 matmul is bf16-pass based -> loose tolerance.
    assert jnp.allclose(out, ref, atol=2e-2, rtol=2e-2), (
        float(jnp.max(jnp.abs(out - ref))))

    # Second shape exercising multiple length tiles + ragged tail + padding.
    L2 = 300
    x2 = jax.random.normal(kx2, (B, C_IN, L2), dtype=jnp.float32)
    out2 = jax.block_until_ready(conv_block1d(x2, w1, b1, w2, b2, max_tile=128))
    ref2 = _reference(x2, w1, b1, w2, b2)
    assert out2.shape == (B, C_OUT, L2 - 4), out2.shape
    assert jnp.allclose(out2, ref2, atol=2e-2, rtol=2e-2), (
        float(jnp.max(jnp.abs(out2 - ref2))))

    print("KERNEL_OK")
</pallas_src>

<mosaic_0001>
module attributes {stable_mosaic.version = 11 : i64} {
  func.func @conv_block1d_kernel(%arg0: i32, %arg1: i32, %arg2: memref<1x15x128xf32, #tpu.memory_space<vmem>>, %arg3: memref<192x15xf32, #tpu.memory_space<vmem>>, %arg4: memref<192x1xf32, #tpu.memory_space<vmem>>, %arg5: memref<128x192xf32, #tpu.memory_space<vmem>>, %arg6: memref<128x1xf32, #tpu.memory_space<vmem>>, %arg7: memref<1x128x128xf32, #tpu.memory_space<vmem>>) attributes {dimension_semantics = [#tpu.dimension_semantics<parallel>, #tpu.dimension_semantics<parallel>], iteration_bounds = array<i64: 2, 1>, scalar_prefetch = 0 : i64, scratch_operands = 0 : i64, tpu.core_type = #tpu.core_type<tc>, window_params = [{transform_indices = @transform_0, window_bounds = array<i64: 1, 15, 128>}, {pipeline_mode = #tpu.pipeline_mode<synchronous>, transform_indices = @transform_1, window_bounds = array<i64: 192, 15>}, {pipeline_mode = #tpu.pipeline_mode<synchronous>, transform_indices = @transform_2, window_bounds = array<i64: 192, 1>}, {pipeline_mode = #tpu.pipeline_mode<synchronous>, transform_indices = @transform_3, window_bounds = array<i64: 128, 192>}, {pipeline_mode = #tpu.pipeline_mode<synchronous>, transform_indices = @transform_4, window_bounds = array<i64: 128, 1>}, {transform_indices = @transform_5, window_bounds = array<i64: 1, 128, 128>}]} {
    %c0 = arith.constant 0 : index
    %c0_0 = arith.constant 0 : index
    %c0_1 = arith.constant 0 : index
    %0 = vector.load %arg2[%c0, %c0_0, %c0_1] : memref<1x15x128xf32, #tpu.memory_space<vmem>>, vector<1x15x128xf32>
    %1 = vector.shape_cast %0 : vector<1x15x128xf32> to vector<15x128xf32>
    %c0_2 = arith.constant 0 : index
    %c0_3 = arith.constant 0 : index
    %2 = vector.load %arg3[%c0_2, %c0_3] : memref<192x15xf32, #tpu.memory_space<vmem>>, vector<192x15xf32>
    %cst = arith.constant dense<0.000000e+00> : vector<192x128xf32>
    %3 = tpu.matmul %2, %1, %cst {dimension_numbers = #tpu.dot_dimension_numbers<[1], [0], [0], [1], [0, 0, 1, 1], [], []>} : vector<192x15xf32>, vector<15x128xf32>, vector<192x128xf32> -> vector<192x128xf32>
    %c0_4 = arith.constant 0 : index
    %c0_5 = arith.constant 0 : index
    %4 = vector.load %arg4[%c0_4, %c0_5] : memref<192x1xf32, #tpu.memory_space<vmem>>, vector<192x1xf32>
    %5 = vector.broadcast %4 : vector<192x1xf32> to vector<192x128xf32>
    %6 = arith.addf %3, %5 : vector<192x128xf32>
    %cst_6 = arith.constant 0.000000e+00 : f32
    %7 = vector.broadcast %cst_6 : f32 to vector<192x128xf32>
    %8 = arith.maximumf %6, %7 : vector<192x128xf32>
    %c0_7 = arith.constant 0 : index
    %c0_8 = arith.constant 0 : index
    %9 = vector.load %arg5[%c0_7, %c0_8] : memref<128x192xf32, #tpu.memory_space<vmem>>, vector<128x192xf32>
    %cst_9 = arith.constant dense<0.000000e+00> : vector<128x128xf32>
    %10 = tpu.matmul %9, %8, %cst_9 {dimension_numbers = #tpu.dot_dimension_numbers<[1], [0], [0], [1], [0, 0, 1, 1], [], []>} : vector<128x192xf32>, vector<192x128xf32>, vector<128x128xf32> -> vector<128x128xf32>
    %c0_10 = arith.constant 0 : index
    %c0_11 = arith.constant 0 : index
    %11 = vector.load %arg6[%c0_10, %c0_11] : memref<128x1xf32, #tpu.memory_space<vmem>>, vector<128x1xf32>
    %12 = vector.broadcast %11 : vector<128x1xf32> to vector<128x128xf32>
    %13 = arith.addf %10, %12 : vector<128x128xf32>
    %cst_12 = arith.constant 0.000000e+00 : f32
    %14 = vector.broadcast %cst_12 : f32 to vector<128x128xf32>
    %15 = arith.maximumf %13, %14 : vector<128x128xf32>
    %c0_13 = arith.constant 0 : index
    %c0_14 = arith.constant 0 : index
    %c0_15 = arith.constant 0 : index
    %16 = vector.load %arg7[%c0_13, %c0_14, %c0_15] : memref<1x128x128xf32, #tpu.memory_space<vmem>>, vector<1x128x128xf32>
    %17 = vector.shape_cast %16 : vector<1x128x128xf32> to vector<128x128xf32>
    %18 = vector.shape_cast %15 : vector<128x128xf32> to vector<1x128x128xf32>
    tpu.vector_store %arg7[%c0_13, %c0_14, %c0_15], %18 {strides = array<i32>} : memref<1x128x128xf32, #tpu.memory_space<vmem>>, vector<1x128x128xf32>,
    return
  }
  func.func @transform_0(%arg0: i32, %arg1: i32) -> (i32, i32, i32) {
    %c0_i32 = arith.constant 0 : i32
    %c0_i32_0 = arith.constant 0 : i32
    return %arg0, %c0_i32, %arg1 : i32, i32, i32
  }
  func.func @transform_1(%arg0: i32, %arg1: i32) -> (i32, i32) {
    %c0_i32 = arith.constant 0 : i32
    %c0_i32_0 = arith.constant 0 : i32
    %c0_i32_1 = arith.constant 0 : i32
    return %c0_i32, %c0_i32_0 : i32, i32
  }
  func.func @transform_2(%arg0: i32, %arg1: i32) -> (i32, i32) {
    %c0_i32 = arith.constant 0 : i32
    %c0_i32_0 = arith.constant 0 : i32
    %c0_i32_1 = arith.constant 0 : i32
    return %c0_i32, %c0_i32_0 : i32, i32
  }
  func.func @transform_3(%arg0: i32, %arg1: i32) -> (i32, i32) {
    %c0_i32 = arith.constant 0 : i32
    %c0_i32_0 = arith.constant 0 : i32
    %c0_i32_1 = arith.constant 0 : i32
    return %c0_i32, %c0_i32_0 : i32, i32
  }
  func.func @transform_4(%arg0: i32, %arg1: i32) -> (i32, i32) {
    %c0_i32 = arith.constant 0 : i32
    %c0_i32_0 = arith.constant 0 : i32
    %c0_i32_1 = arith.constant 0 : i32
    return %c0_i32, %c0_i32_0 : i32, i32
  }
  func.func @transform_5(%arg0: i32, %arg1: i32) -> (i32, i32, i32) {
    %c0_i32 = arith.constant 0 : i32
    %c0_i32_0 = arith.constant 0 : i32
    return %arg0, %c0_i32, %arg1 : i32, i32, i32
  }
}

</mosaic_0001>

<bundles_post_ra>
// kernel: tpu_custom_call.1
= control target key start
LH: loop header
LB: loop body
LE: loop exit
PB: predicated region body
PF: predicated region fallthrough
CT: control target
= control target key end

     0   :  { %10 = vsyncpa [#allocation3], 0  ;;  %s2013_s0 = inlined_call_operand.vmem [shape: f32[2,15,128], index: 0, kind: input, shape index: {}]   ;;  %s2014_s1 = inlined_call_operand.vmem [shape: f32[192,15], index: 1, kind: input, shape index: {}]   ;;  %s2015_s2 = inlined_call_operand.vmem [shape: f32[192,1], index: 2, kind: input, shape index: {}]   ;;  %s2016_s3 = inlined_call_operand.vmem [shape: f32[128,192], index: 3, kind: input, shape index: {}]   ;;  %s2017_s4 = inlined_call_operand.vmem [shape: f32[128,1], index: 4, kind: input, shape index: {}]   ;;  %s2018_s5 = inlined_call_operand.hbm [shape: f32[2,128,128], index: 5, kind: output, shape index: {}]  }
   0x1   :  { %12 = vsyncpa [#allocation3 + $0x1], 0  ;;  %s1517_s18 = smov 0   ;;  %s1519_s19 = smov 0  }
   0x2   :  { %s1521_s20 = smov 0   ;;  %s1523_s21 = smov 0  }
   0x3   :  { %s1525_s22 = smov 0   ;;  %s1527_s23 = smov 0  }
   0x4 LB: > { %s1151_s24 = sadd.s32 4294967295, %s1479_s23   ;;  %s1152_s25 = sadd.s32 4294967294, %s1479_s23   ;;  %s1479_s23 = sphi %s1527_s23, %s18_s23   ;;  %s1475_s22 = sphi %s1525_s22, %s2025_s22   ;;  %s1471_s21 = sphi %s1523_s21, %s2024_s21   ;;  %s1467_s20 = sphi %s1521_s20, %s2023_s20   ;;  %s1463_s19 = sphi %s1519_s19, %s2022_s19   ;;  %s1459_s18 = sphi %s1517_s18, %s2021_s18  }
   0x5   : > { %s30_s26 = sadd.s32 1, %s1475_s22  ;;  %s151_s27 = sadd.s32 1, %s1467_s20 }
   0x6   : > { %p32_p0 = scmp.ge.s32.totalorder %s30_s26, 2  ;;  %p161_p1 = scmp.ne.s32.totalorder %s1467_s20, %s1463_s19 }
   0x7   : > { %p162_p2 = scmp.eq.s32.totalorder %s1151_s24, 1  ;;  %p167_p3 = scmp.ne.s32.totalorder %s1463_s19, %s1459_s18 }
   0x8   : > { %s2027_s26 = smov (%p32_p0, %s30_s26), 0  ;;  %p168_p5 = scmp.eq.s32.totalorder %s1152_s25, 1 }
   0x9   : > { %p1557_p4 = por %p162_p2, %p161_p1  ;;  %s146_s29 = ssub.s32 %s1475_s22, %s2027_s26 }
   0xa   : > { %p1155_p6 = scmp.ge.s32.totalorder %s1479_s23, 1  ;;  %p149_p7 = scmp.eq.s32.totalorder %s146_s29, 0 }
   0xb   : > { %p1564_p8 = por %p168_p5, %p167_p3  ;;  %p209_p9 = scmp.lt.s32.totalorder %s1479_s23, 3 }
   0xc   : > { %s1570_s6 = scalar_select %p149_p7, %s1467_s20, %s151_s27  }
   0xd   : > { %p210_p10 = pnand %p1155_p6, %p209_p9 }
   0xe   : > { %p240_p11 = scmp.lt.s32.totalorder (!%p210_p10), %s1471_s21, 1  ;;  %v250_v0 = vld [vmem:[%s2014_s1] sm:$0xff] (!%p210_p10)  ;;  %vm418_vm0 = vcmask (!%p210_p10), 121856   ;;  %v1481_v1 = vmov (!%p210_p10), 0   ;;  %vm491_vm1 = vcmask (!%p210_p10), 1046528   ;;  %v276_v3 = vld [vmem:[%s2015_s2 + $0x10] sm:$0xff] (!%p210_p10) }
   0xf   : > { %213 = sbr.rel (%p210_p10) target bundleno = 562 (0x232), region = 40  ;;  %1237 = vmatprep.mubr.msk.f32.mxu0 (!%p210_p10), %vm418_vm0, %v250_v0  ;;  %1399 = vset.pattern.permute.xlu0 (!%p210_p10), %v1481_v1  ;;  %v274_v2 = vld [vmem:[%s2015_s2] sm:$0xff] (!%p210_p10)  ;;  %v275_v4 = vld [vmem:[%s2015_s2 + $0x8] sm:$0xff] (!%p210_p10)  ;;  %v277_v5 = vld [vmem:[%s2015_s2 + $0x18] sm:$0xff] (!%p210_p10)  ;;  %vm1482_vm2 = vmmov (!%p210_p10), 1   ;;  %vm832_vm4 = vcmask (!%p210_p10), 523264  }
  0x10   : > { %1400 = vset.pattern.permute.xlu1 (!%p210_p10), %v1481_v1  ;;  %300 = vperm.xlu0 (!%p210_p10), %1399, %v274_v2   ;;  %vm1274_vm3 = vmpackc.low (!%p210_p10), %vm491_vm1, %vm1482_vm2  ;;  %v278_v9 = vld [vmem:[%s2015_s2 + $0x20] sm:$0xff] (!%p210_p10)  ;;  %v279_v10 = vld [vmem:[%s2015_s2 + $0x28] sm:$0xff] (!%p210_p10)  ;;  %s1206_s12 = sshll.u32 (!%p210_p10), %s1471_s21, 11  ;;  %s1484_s24 = smov (!%p210_p10), [#allocation2]  }
  0x11   : > { %310 = vperm.xlu1 (!%p210_p10), %1400, %v276_v3   ;;  %v251_v11 = vld [vmem:[%s2014_s1 + $0x8] sm:$0xff] (!%p210_p10)  ;;  %v252_v12 = vld [vmem:[%s2014_s1 + $0x10] sm:$0xff] (!%p210_p10)  ;;  %v281_v14 = vld [vmem:[%s2015_s2 + $0x38] sm:$0xff] (!%p210_p10)  ;;  %s1960_s16 = scalar_lea.hbm (!%p210_p10), %s2018_s5, %s1206_s12 }
  0x12   : > { %v280_v13 = vld [vmem:[%s2015_s2 + $0x30] sm:$0xff] (!%p210_p10)  ;;  %v253_v15 = vld [vmem:[%s2014_s1 + $0x18] sm:$0xff] (!%p210_p10)  ;;  %v254_v16 = vld [vmem:[%s2014_s1 + $0x20] sm:$0xff] (!%p210_p10) }
  0x13   : > { %v282_v17 = vld [vmem:[%s2015_s2 + $0x40] sm:$0xff] (!%p210_p10)  ;;  %v283_v18 = vld [vmem:[%s2015_s2 + $0x48] sm:$0xff] (!%p210_p10)  ;;  %v256_v20 = vld [vmem:[%s2014_s1 + $0x30] sm:$0xff] (!%p210_p10) }
  0x14   : > { %305 = vperm.xlu0 (!%p210_p10), %1399, %v275_v4   ;;  %v255_v19 = vld [vmem:[%s2014_s1 + $0x28] sm:$0xff] (!%p210_p10)  ;;  %v284_v21 = vld [vmem:[%s2015_s2 + $0x50] sm:$0xff] (!%p210_p10)  ;;  %v285_v22 = vld [vmem:[%s2015_s2 + $0x58] sm:$0xff] (!%p210_p10)  ;;  %v1483_v4 = vmov (!%p210_p10), 0.0|0.0  }
  0x15   : > { %315 = vperm.xlu1 (!%p210_p10), %1400, %v277_v5   ;;  %v257_v23 = vld [vmem:[%s2014_s1 + $0x38] sm:$0xff] (!%p210_p10)  ;;  %v258_v24 = vld [vmem:[%s2014_s1 + $0x40] sm:$0xff] (!%p210_p10)  ;;  %v287_v26 = vld [vmem:[%s2015_s2 + $0x68] sm:$0xff] (!%p210_p10)  ;;  %1315 = vmatprep.subr.bf16.mxu1 (!%p210_p10), %v1483_v4 }
  0x16   : > { %s241_s9 = scalar_select %p240_p11, %s1471_s21, 1  ;;  %v286_v25 = vld [vmem:[%s2015_s2 + $0x60] sm:$0xff]  ;;  %v259_v27 = vld [vmem:[%s2014_s1 + $0x48] sm:$0xff]  ;;  %v260_v28 = vld [vmem:[%s2014_s1 + $0x50] sm:$0xff] }
  0x17   : > { %v288_v29 = vld [vmem:[%s2015_s2 + $0x70] sm:$0xff]  ;;  %v289_v30 = vld [vmem:[%s2015_s2 + $0x78] sm:$0xff]  ;;  %v262_v32 = vld [vmem:[%s2014_s1 + $0x60] sm:$0xff] }
  0x18   : > { %s1205_s14 = sshll.u32 %s241_s9, 4  ;;  %320 = vperm.xlu0 %1399, %v278_v9   ;;  %v261_v31 = vld [vmem:[%s2014_s1 + $0x58] sm:$0xff]  ;;  %v290_v33 = vld [vmem:[%s2015_s2 + $0x80] sm:$0xff]  ;;  %v291_v34 = vld [vmem:[%s2015_s2 + $0x88] sm:$0xff]  ;;  %s237_s9 = sand.u32 1, %s1463_s19  }
  0x19   : > { %s247_s25 = scalar_lea.vmem %s2013_s0, %s1205_s14  ;;  %325 = vperm.xlu1 %1400, %v279_v10   ;;  %v263_v35 = vld [vmem:[%s2014_s1 + $0x68] sm:$0xff]  ;;  %v264_v36 = vld [vmem:[%s2014_s1 + $0x70] sm:$0xff]  ;;  %v293_v38 = vld [vmem:[%s2015_s2 + $0x98] sm:$0xff]  ;;  %s1156_s10 = sshll.u32 %s237_s9, 7 }
  0x1a   : > { %v248_v6 = vld [vmem:[%s247_s25] sm:$0xff]  ;;  %v249_v7 = vld [vmem:[%s247_s25 + $0x8] sm:$0x7f]  ;;  %v292_v37 = vld [vmem:[%s2015_s2 + $0x90] sm:$0xff]  ;;  %s1936_s11 = scalar_lea.vmem [#allocation2], %s1156_s10  ;;  %s1967_s21 = scalar_lea.sflag [#allocation3], %s237_s9 }
  0x1b   : > { %v1273_v8 = vpack.c.bf16 %v249_v7, %v248_v6  ;;  %v265_v39 = vld [vmem:[%s2014_s1 + $0x78] sm:$0xff]  ;;  %v266_v40 = vld [vmem:[%s2014_s1 + $0x80] sm:$0xff]  ;;  %v295_v42 = vld [vmem:[%s2015_s2 + $0xa8] sm:$0xff]  ;;  %s1073_s13 = sshll.u32 %s1936_s11, 4  ;;  %s1405_s25 = sshll.u32 %s1484_s24, 4  ;;  %s1962_s13 = int_to_ptr.vmem [resolvable:$true] %s1073_s13  ;;  %s1406_s25 = int_to_ptr.vmem [resolvable:$false] %s1405_s25 }
  0x1c   : > { %330 = vperm.xlu0 %1399, %v280_v13   ;;  %v294_v41 = vld [vmem:[%s2015_s2 + $0xa0] sm:$0xff]  ;;  %v267_v43 = vld [vmem:[%s2014_s1 + $0x88] sm:$0xff]  ;;  %v268_v44 = vld [vmem:[%s2014_s1 + $0x90] sm:$0xff]  ;;  %s1401_s17 = scalar_lea.vmem %s1962_s13, 2048  ;;  %s1407_s27 = scalar_lea.vmem %s1406_s25, 4096 }
  0x1d   : > { %1275 = vmatprep.subr.msk.bf16.mxu0 %vm1274_vm3, %v1273_v8  ;;  %335 = vperm.xlu1 %1400, %v281_v14   ;;  %v296_v45 = vld [vmem:[%s2015_s2 + $0xb0] sm:$0xff]  ;;  %v297_v46 = vld [vmem:[%s2015_s2 + $0xb8] sm:$0xff]  ;;  %v270_v48 = vld [vmem:[%s2014_s1 + $0xa0] sm:$0xff]  ;;  %p1402_p12 = scmp.ne.s32.totalorder %s1962_s13, %s1401_s17  ;;  %p1408_p1 = scmp.lt.s32.totalorder %s1962_s13, %s1406_s25 }
  0x1e   : > { %1278 = vmatpush3.bf16.msk.msra.mxu0 %vm1274_vm3, %v1273_v8  ;;  %v269_v47 = vld [vmem:[%s2014_s1 + $0x98] sm:$0xff]  ;;  %v736_v49 = vld [vmem:[%s2017_s4] sm:$0xff]  ;;  %v737_v50 = vld [vmem:[%s2017_s4 + $0x8] sm:$0xff]  ;;  %p1409_p2 = scmp.lt.s32.totalorder %s1407_s27, %s1401_s17 }
  0x1f   : > { %v271_v51 = vld [vmem:[%s2014_s1 + $0xa8] sm:$0xff]  ;;  %v272_v52 = vld [vmem:[%s2014_s1 + $0xb0] sm:$0xff]  ;;  %v739_v54 = vld [vmem:[%s2017_s4 + $0x18] sm:$0xff]  ;;  %1279 = vmatprep.subr.bf16.mxu0 %v1483_v4  ;;  %p1403_p13 = pnand %p1402_p12, %p1557_p4 }
  0x20   : > { %340 = vperm.xlu0 %1399, %v282_v17   ;;  %v738_v53 = vld [vmem:[%s2017_s4 + $0x10] sm:$0xff]  ;;  %v273_v55 = vld [vmem:[%s2014_s1 + $0xb8] sm:$0xff]  ;;  %v740_v56 = vld [vmem:[%s2017_s4 + $0x20] sm:$0xff]  ;;  %p1410_p3 = por %p1409_p2, %p1408_p1 }
  0x21   : > { %1238 = vmatmul.mubr.msk.f32.vlgmr.msra.gmra.mrb[0].mxu0 %vm418_vm0, %v251_v11  ;;  %345 = vperm.xlu1 %1400, %v283_v18   ;;  %v741_v57 = vld [vmem:[%s2017_s4 + $0x28] sm:$0xff]  ;;  %v742_v58 = vld [vmem:[%s2017_s4 + $0x30] sm:$0xff]  ;;  %v743_v59 = vld [vmem:[%s2017_s4 + $0x38] sm:$0xff]  ;;  %p1404_p0 = pneg %p1403_p13 }
  0x22   : > { %1240 = vmatprep.mubr.msk.f32.mxu0 %vm418_vm0, %v252_v12  ;;  %v744_v60 = vld [vmem:[%s2017_s4 + $0x40] sm:$0xff]  ;;  %v745_v61 = vld [vmem:[%s2017_s4 + $0x48] sm:$0xff]  ;;  %v746_v62 = vld [vmem:[%s2017_s4 + $0x50] sm:$0xff] }
  0x23   : > { %v747_v63 = vld [vmem:[%s2017_s4 + $0x58] sm:$0xff]  ;;  %v748_v0 = vld [vmem:[%s2017_s4 + $0x60] sm:$0xff]  ;;  %v749_v1 = vld [vmem:[%s2017_s4 + $0x68] sm:$0xff]  ;;  %p1411_p5 = pnand %p1410_p3, %p1404_p0 }
  0x24   : > { %350 = vperm.xlu0 %1399, %v284_v21   ;;  %v750_v2 = vld [vmem:[%s2017_s4 + $0x70] sm:$0xff]  ;;  %v751_v3 = vld [vmem:[%s2017_s4 + $0x78] sm:$0xff]  ;;  %v705_v5 = vld [vmem:[%s2016_s3 + $0x8] sm:$0xff] }
  0x25   : > { %1241 = vmatmul.mubr.msk.f32.gmra.mrb[2].mxu0 %vm418_vm0, %v253_v15  ;;  %355 = vperm.xlu1 %1400, %v285_v22   ;;  %v719_v6 = vld [vmem:[%s2016_s3 + $0x78] sm:$0xff] }
  0x26   : > { %1243 = vmatprep.mubr.msk.f32.mxu0 %vm418_vm0, %v254_v16  ;;  %1191 = vmatprep.mubr.msk.f32.mxu1 %vm832_vm4, %v719_v6 }
  0x28   : > { %360 = vperm.xlu0 %1399, %v286_v25  }
  0x29   : > { %1244 = vmatmul.mubr.msk.f32.gmra.mrb[4].mxu0 %vm418_vm0, %v255_v19  ;;  %365 = vperm.xlu1 %1400, %v287_v26  }
  0x2a   : > { %1246 = vmatprep.mubr.msk.f32.mxu0 %vm418_vm0, %v256_v20 }
  0x2c   : > { %370 = vperm.xlu0 %1399, %v288_v29  }
  0x2d   : > { %1247 = vmatmul.mubr.msk.f32.gmra.mrb[6].mxu0 %vm418_vm0, %v257_v23  ;;  %375 = vperm.xlu1 %1400, %v289_v30  }
  0x2e   : > { %1249 = vmatprep.mubr.msk.f32.mxu0 %vm418_vm0, %v258_v24 }
  0x30   : > { %380 = vperm.xlu0 %1399, %v290_v33  }
  0x31   : > { %1250 = vmatmul.mubr.msk.f32.gmra.mrb[8].mxu0 %vm418_vm0, %v259_v27  ;;  %385 = vperm.xlu1 %1400, %v291_v34  }
  0x32   : > { %1252 = vmatprep.mubr.msk.f32.mxu0 %vm418_vm0, %v260_v28 }
  0x34   : > { %390 = vperm.xlu0 %1399, %v292_v37  }
  0x35   : > { %1253 = vmatmul.mubr.msk.f32.gmra.mrb[10].mxu0 %vm418_vm0, %v261_v31  ;;  %395 = vperm.xlu1 %1400, %v293_v38  }
  0x36   : > { %1255 = vmatprep.mubr.msk.f32.mxu0 %vm418_vm0, %v262_v32 }
  0x38   : > { %400 = vperm.xlu0 %1399, %v294_v41  }
  0x39   : > { %1256 = vmatmul.mubr.msk.f32.gmra.mrb[12].mxu0 %vm418_vm0, %v263_v35  ;;  %405 = vperm.xlu1 %1400, %v295_v42  }
  0x3a   : > { %1258 = vmatprep.mubr.msk.f32.mxu0 %vm418_vm0, %v264_v36 }
  0x3c   : > { %410 = vperm.xlu0 %1399, %v296_v45  }
  0x3d   : > { %1259 = vmatmul.mubr.msk.f32.gmra.mrb[14].mxu0 %vm418_vm0, %v265_v39  ;;  %415 = vperm.xlu1 %1400, %v297_v46  }
  0x3e   : > { %1261 = vmatprep.mubr.msk.f32.mxu0 %vm418_vm0, %v266_v40 }
  0x40   : > { %754 = vperm.xlu0 %1399, %v736_v49  }
  0x41   : > { %1262 = vmatmul.mubr.msk.f32.gmra.mrb[16].mxu0 %vm418_vm0, %v267_v43  ;;  %759 = vperm.xlu1 %1400, %v737_v50  }
  0x42   : > { %1264 = vmatprep.mubr.msk.f32.mxu0 %vm418_vm0, %v268_v44 }
  0x44   : > { %764 = vperm.xlu0 %1399, %v738_v53  }
  0x45   : > { %1265 = vmatmul.mubr.msk.f32.gmra.mrb[18].mxu0 %vm418_vm0, %v269_v47  ;;  %769 = vperm.xlu1 %1400, %v739_v54  }
  0x46   : > { %1267 = vmatprep.mubr.msk.f32.mxu0 %vm418_vm0, %v270_v48 }
  0x48   : > { %774 = vperm.xlu0 %1399, %v740_v56  }
  0x49   : > { %1268 = vmatmul.mubr.msk.f32.gmra.mrb[20].mxu0 %vm418_vm0, %v271_v51  ;;  %779 = vperm.xlu1 %1400, %v741_v57  }
  0x4a   : > { %1270 = vmatprep.mubr.msk.f32.mxu0 %vm418_vm0, %v272_v52 }
  0x4c   : > { %784 = vperm.xlu0 %1399, %v742_v58  }
  0x4d   : > { %1271 = vmatmul.mubr.msk.f32.gmra.mrb[22].mxu0 %vm418_vm0, %v273_v55  ;;  %789 = vperm.xlu1 %1400, %v743_v59  }
  0x4e   : > { %1184 = vmatprep.mubr.msk.f32.mxu0 %vm832_vm4, %v705_v5 }
  0x50   : > { %794 = vperm.xlu0 %1399, %v744_v60  }
  0x51   : > { %799 = vperm.xlu1 %1400, %v745_v61  }
  0x54   : > { %804 = vperm.xlu0 %1399, %v746_v62  }
  0x55   : > { %809 = vperm.xlu1 %1400, %v747_v63  }
  0x58   : > { %814 = vperm.xlu0 %1399, %v748_v0  }
  0x59   : > { %819 = vperm.xlu1 %1400, %v749_v1  }
  0x5c   : > { %824 = vperm.xlu0 %1399, %v750_v2  }
  0x5d   : > { %829 = vperm.xlu1 %1400, %v751_v3  }
  0x8f   : > { %v301_v8 = vpop.permute.xlu0 %300 }
  0x90   : > { %v311_v7 = vpop.permute.xlu1 %310 }
  0x93   : > { %v306_v10 = vpop.permute.xlu0 %305 }
  0x94   : > { %v316_v9 = vpop.permute.xlu1 %315 }
  0x97   : > { %v321_v12 = vpop.permute.xlu0 %320 }
  0x98   : > { %v326_v11 = vpop.permute.xlu1 %325 }
  0x9b   : > { %v331_v14 = vpop.permute.xlu0 %330 }
  0x9c   : > { %v336_v13 = vpop.permute.xlu1 %335 }
  0x9f   : > { %v341_v20 = vpop.permute.xlu0 %340 }
  0xa0   : > { %v346_v18 = vpop.permute.xlu1 %345 }
  0xa3   : > { %v351_v32 = vpop.permute.xlu0 %350 }
  0xa4   : > { %v356_v29 = vpop.permute.xlu1 %355 }
  0xa7   : > { %v361_v45 = vpop.permute.xlu0 %360 }
  0xa8   : > { %v366_v42 = vpop.permute.xlu1 %365 }
  0xab   : > { %v371_v57 = vpop.permute.xlu0 %370 }
  0xac   : > { %v376_v54 = vpop.permute.xlu1 %375 }
  0xb0   : > { %v386_v3 = vpop.permute.xlu1 %385 }
  0xf4   : > { %v1239_v15 = vpop.f32.mrb[0].mxu0 }
  0xf5   : > { %v567_v16 = vadd.f32 %v1239_v15, %v306_v10  ;;  %v561_v17 = vpop.f32.mrb[1].mxu0 }
  0xf6   : > { %v562_v19 = vadd.f32 %v561_v17, %v301_v8 }
  0xf7   : > { %v681_v21 = vmax.f32 %v567_v16, 0.0  ;;  %v396_v16 = vpop.permute.xlu1 %395 }
  0xf8   : > { %v680_v22 = vmax.f32 %v562_v19, 0.0  ;;  %v1242_v23 = vpop.f32.mrb[2].mxu0 }
  0xf9   : > { %v577_v24 = vadd.f32 %v1242_v23, %v316_v9  ;;  %v571_v25 = vpop.f32.mrb[3].mxu0 }
  0xfa   : > { %v1280_v26 = vpack.c.bf16 %v681_v21, %v680_v22  ;;  %v572_v27 = vadd.f32 %v571_v25, %v311_v7  ;;  %v381_v7 = vpop.permute.xlu0 %380 }
  0xfb   : > { %v683_v28 = vmax.f32 %v577_v24, 0.0 }
  0xfc   : > { %v682_v30 = vmax.f32 %v572_v27, 0.0  ;;  %v1245_v31 = vpop.f32.mrb[4].mxu0  ;;  %1281 = vmatpush1.bf16.msra.mxu0 %v1280_v26  ;;  %1327 = vmatpush1.bf16.msra.mxu1 %v1280_v26 }
  0xfd   : > { %v587_v33 = vadd.f32 %v1245_v31, %v326_v11  ;;  %v581_v34 = vpop.f32.mrb[5].mxu0  ;;  %1282 = vmatprep.subr.bf16.mxu0 %v1483_v4  ;;  %1316 = vmatprep.subr.bf16.mxu1 %v1483_v4 }
  0xfe   : > { %v1283_v35 = vpack.c.bf16 %v683_v28, %v682_v30  ;;  %v582_v36 = vadd.f32 %v581_v34, %v321_v12  ;;  %v391_v19 = vpop.permute.xlu0 %390 }
  0xff   : > { %v685_v37 = vmax.f32 %v587_v33, 0.0 }
 0x100   : > { %v684_v38 = vmax.f32 %v582_v36, 0.0  ;;  %v1248_v39 = vpop.f32.mrb[6].mxu0  ;;  %1284 = vmatpush1.bf16.msra.mxu0 %v1283_v35  ;;  %1328 = vmatpush1.bf16.msra.mxu1 %v1283_v35 }
 0x101   : > { %v597_v40 = vadd.f32 %v1248_v39, %v336_v13  ;;  %v591_v41 = vpop.f32.mrb[7].mxu0  ;;  %1285 = vmatprep.subr.bf16.mxu0 %v1483_v4  ;;  %1317 = vmatprep.subr.bf16.mxu1 %v1483_v4 }
 0x102   : > { %v1286_v43 = vpack.c.bf16 %v685_v37, %v684_v38  ;;  %v592_v44 = vadd.f32 %v591_v41, %v331_v14 }
 0x103   : > { %v687_v46 = vmax.f32 %v597_v40, 0.0 }
 0x104   : > { %v686_v47 = vmax.f32 %v592_v44, 0.0  ;;  %v1251_v48 = vpop.f32.mrb[8].mxu0  ;;  %1287 = vmatpush1.bf16.msra.mxu0 %v1286_v43  ;;  %1329 = vmatpush1.bf16.msra.mxu1 %v1286_v43 }
 0x105   : > { %v607_v49 = vadd.f32 %v1251_v48, %v346_v18  ;;  %v601_v50 = vpop.f32.mrb[9].mxu0  ;;  %1288 = vmatprep.subr.bf16.mxu0 %v1483_v4  ;;  %1318 = vmatprep.subr.bf16.mxu1 %v1483_v4 }
 0x106   : > { %v1289_v51 = vpack.c.bf16 %v687_v46, %v686_v47  ;;  %v602_v52 = vadd.f32 %v601_v50, %v341_v20 }
 0x107   : > { %v689_v53 = vmax.f32 %v607_v49, 0.0 }
 0x108   : > { %v688_v55 = vmax.f32 %v602_v52, 0.0  ;;  %v1254_v56 = vpop.f32.mrb[10].mxu0  ;;  %1290 = vmatpush1.bf16.msra.mxu0 %v1289_v51  ;;  %1330 = vmatpush1.bf16.msra.mxu1 %v1289_v51  ;;  %v704_v52 = vld [vmem:[%s2016_s3] sm:$0xff] }
 0x109   : > { %v617_v58 = vadd.f32 %v1254_v56, %v356_v29  ;;  %v611_v59 = vpop.f32.mrb[11].mxu0  ;;  %1291 = vmatprep.subr.bf16.mxu0 %v1483_v4  ;;  %1319 = vmatprep.subr.bf16.mxu1 %v1483_v4  ;;  %v406_v29 = vpop.permute.xlu1 %405  ;;  %v720_v56 = vld [vmem:[%s2016_s3 + $0x80] sm:$0xff] }
 0x10a   : > { %v1292_v60 = vpack.c.bf16 %v689_v53, %v688_v55  ;;  %v612_v61 = vadd.f32 %v611_v59, %v351_v32  ;;  %v401_v32 = vpop.permute.xlu0 %400  ;;  %v718_v53 = vld [vmem:[%s2016_s3 + $0x70] sm:$0xff]  ;;  %v721_v55 = vld [vmem:[%s2016_s3 + $0x88] sm:$0xff]  ;;  %v708_v59 = vld [vmem:[%s2016_s3 + $0x20] sm:$0xff] }
 0x10b   : > { %v691_v62 = vmax.f32 %v617_v58, 0.0  ;;  %v723_v58 = vld [vmem:[%s2016_s3 + $0x98] sm:$0xff] }
 0x10c   : > { %v690_v63 = vmax.f32 %v612_v61, 0.0  ;;  %v1257_v0 = vpop.f32.mrb[12].mxu0  ;;  %1293 = vmatpush1.bf16.msra.mxu0 %v1292_v60  ;;  %1331 = vmatpush1.bf16.msra.mxu1 %v1292_v60  ;;  %v722_v60 = vld [vmem:[%s2016_s3 + $0x90] sm:$0xff]  ;;  %v711_v61 = vld [vmem:[%s2016_s3 + $0x38] sm:$0xff] }
 0x10d   : > { %v627_v1 = vadd.f32 %v1257_v0, %v366_v42  ;;  %v621_v2 = vpop.f32.mrb[13].mxu0  ;;  %1294 = vmatprep.subr.bf16.mxu0 %v1483_v4  ;;  %1320 = vmatprep.subr.bf16.mxu1 %v1483_v4  ;;  %v416_v41 = vpop.permute.xlu1 %415  ;;  %v724_v0 = vld [vmem:[%s2016_s3 + $0xa0] sm:$0xff] }
 0x10e   : > { %v1295_v5 = vpack.c.bf16 %v691_v62, %v690_v63  ;;  %v622_v6 = vadd.f32 %v621_v2, %v361_v45  ;;  %v411_v44 = vpop.permute.xlu0 %410  ;;  %v725_v62 = vld [vmem:[%s2016_s3 + $0xa8] sm:$0xff]  ;;  %v710_v63 = vld [vmem:[%s2016_s3 + $0x30] sm:$0xff]  ;;  %v727_v2 = vld [vmem:[%s2016_s3 + $0xb8] sm:$0xff] }
 0x10f   : > { %v693_v8 = vmax.f32 %v627_v1, 0.0  ;;  %v713_v1 = vld [vmem:[%s2016_s3 + $0x48] sm:$0xff] }
 0x110   : > { %v692_v9 = vmax.f32 %v622_v6, 0.0  ;;  %v1260_v10 = vpop.f32.mrb[14].mxu0  ;;  %1296 = vmatpush1.bf16.msra.mxu0 %v1295_v5  ;;  %1332 = vmatpush1.bf16.msra.mxu1 %v1295_v5  ;;  %v726_v5 = vld [vmem:[%s2016_s3 + $0xb0] sm:$0xff]  ;;  %v715_v6 = vld [vmem:[%s2016_s3 + $0x58] sm:$0xff] }
 0x111   : > { %v637_v11 = vadd.f32 %v1260_v10, %v376_v54  ;;  %v631_v12 = vpop.f32.mrb[15].mxu0  ;;  %1297 = vmatprep.subr.bf16.mxu0 %v1483_v4  ;;  %1321 = vmatprep.subr.bf16.mxu1 %v1483_v4  ;;  %v707_v54 = vld [vmem:[%s2016_s3 + $0x18] sm:$0xff]  ;;  %v717_v10 = vld [vmem:[%s2016_s3 + $0x68] sm:$0xff] }
 0x112   : > { %v1298_v13 = vpack.c.bf16 %v693_v8, %v692_v9  ;;  %v632_v14 = vadd.f32 %v631_v12, %v371_v57  ;;  %v709_v57 = vld [vmem:[%s2016_s3 + $0x28] sm:$0xff]  ;;  %v714_v8 = vld [vmem:[%s2016_s3 + $0x50] sm:$0xff]  ;;  %v728_v9 = vld [vmem:[%s2016_s3 + $0xc0] sm:$0xff] }
 0x113   : > { %v695_v15 = vmax.f32 %v637_v11, 0.0  ;;  %v731_v11 = vld [vmem:[%s2016_s3 + $0xd8] sm:$0xff]  ;;  %v716_v12 = vld [vmem:[%s2016_s3 + $0x60] sm:$0xff] }
 0x114   : > { %v694_v17 = vmax.f32 %v632_v14, 0.0  ;;  %v1263_v18 = vpop.f32.mrb[16].mxu0  ;;  %1299 = vmatpush1.bf16.msra.mxu0 %v1298_v13  ;;  %1333 = vmatpush1.bf16.msra.mxu1 %v1298_v13  ;;  %v730_v13 = vld [vmem:[%s2016_s3 + $0xd0] sm:$0xff]  ;;  %v733_v14 = vld [vmem:[%s2016_s3 + $0xe8] sm:$0xff] }
 0x115   : > { %v647_v20 = vadd.f32 %v1263_v18, %v386_v3  ;;  %v641_v21 = vpop.f32.mrb[17].mxu0  ;;  %1300 = vmatprep.subr.bf16.mxu0 %v1483_v4  ;;  %1322 = vmatprep.subr.bf16.mxu1 %v1483_v4  ;;  %v712_v3 = vld [vmem:[%s2016_s3 + $0x40] sm:$0xff]  ;;  %v755_v18 = vpop.permute.xlu0 %754 }
 0x116   : > { %v1301_v22 = vpack.c.bf16 %v695_v15, %v694_v17  ;;  %v642_v23 = vadd.f32 %v641_v21, %v381_v7  ;;  %v729_v7 = vld [vmem:[%s2016_s3 + $0xc8] sm:$0xff]  ;;  %v732_v15 = vld [vmem:[%s2016_s3 + $0xe0] sm:$0xff]  ;;  %v734_v17 = vld [vmem:[%s2016_s3 + $0xf0] sm:$0xff] }
 0x117   : > { %v697_v24 = vmax.f32 %v647_v20, 0.0 }
 0x118   : > { %v696_v25 = vmax.f32 %v642_v23, 0.0  ;;  %v1266_v26 = vpop.f32.mrb[18].mxu0  ;;  %1302 = vmatpush1.bf16.msra.mxu0 %v1301_v22  ;;  %1334 = vmatpush1.bf16.msra.mxu1 %v1301_v22 }
 0x119   : > { %v657_v27 = vadd.f32 %v1266_v26, %v396_v16  ;;  %v651_v28 = vpop.f32.mrb[19].mxu0  ;;  %1303 = vmatprep.subr.bf16.mxu0 %v1483_v4  ;;  %1323 = vmatprep.subr.bf16.mxu1 %v1483_v4  ;;  %v735_v16 = vld [vmem:[%s2016_s3 + $0xf8] sm:$0xff]  ;;  %v765_v20 = vpop.permute.xlu0 %764 }
 0x11a   : > { %v1304_v30 = vpack.c.bf16 %v697_v24, %v696_v25  ;;  %v652_v31 = vadd.f32 %v651_v28, %v391_v19  ;;  %v760_v19 = vpop.permute.xlu1 %759 }
 0x11b   : > { %v699_v33 = vmax.f32 %v657_v27, 0.0 }
 0x11c   : > { %v698_v34 = vmax.f32 %v652_v31, 0.0  ;;  %v1269_v35 = vpop.f32.mrb[20].mxu0  ;;  %1305 = vmatpush1.bf16.msra.mxu0 %v1304_v30  ;;  %1335 = vmatpush1.bf16.msra.mxu1 %v1304_v30 }
 0x11d   : > { %v667_v36 = vadd.f32 %v1269_v35, %v406_v29  ;;  %v661_v37 = vpop.f32.mrb[21].mxu0  ;;  %1306 = vmatprep.subr.bf16.mxu0 %v1483_v4  ;;  %1324 = vmatprep.subr.bf16.mxu1 %v1483_v4  ;;  %v775_v22 = vpop.permute.xlu0 %774 }
 0x11e   : > { %v1307_v38 = vpack.c.bf16 %v699_v33, %v698_v34  ;;  %v662_v39 = vadd.f32 %v661_v37, %v401_v32  ;;  %v770_v21 = vpop.permute.xlu1 %769 }
 0x11f   : > { %v701_v40 = vmax.f32 %v667_v36, 0.0 }
 0x120   : > { %v700_v42 = vmax.f32 %v662_v39, 0.0  ;;  %v1272_v43 = vpop.f32.mrb[22].mxu0  ;;  %1308 = vmatpush1.bf16.msra.mxu0 %v1307_v38  ;;  %1336 = vmatpush1.bf16.msra.mxu1 %v1307_v38 }
 0x121   : > { %v677_v45 = vadd.f32 %v1272_v43, %v416_v41  ;;  %v671_v46 = vpop.f32.mrb[23].mxu0  ;;  %1309 = vmatprep.subr.bf16.mxu0 %v1483_v4  ;;  %1325 = vmatprep.subr.bf16.mxu1 %v1483_v4  ;;  %v1932_v24 = vpop.permute.xlu0 %784 }
 0x122   : > { %v1310_v47 = vpack.c.bf16 %v701_v40, %v700_v42  ;;  %v672_v48 = vadd.f32 %v671_v46, %v411_v44  ;;  %v1929_v23 = vpop.permute.xlu1 %779 }
 0x123   : > { %v703_v49 = vmax.f32 %v677_v45, 0.0 }
 0x124   : > { %v702_v50 = vmax.f32 %v672_v48, 0.0  ;;  %1311 = vmatpush1.bf16.msra.mxu0 %v1310_v47  ;;  %1337 = vmatpush1.bf16.msra.mxu1 %v1310_v47 }
 0x125   : > { %1312 = vmatprep.subr.bf16.mxu0 %v1483_v4  ;;  %1326 = vmatprep.subr.bf16.mxu1 %v1483_v4  ;;  %v706_v4 = vld [vmem:[%s2016_s3 + $0x10] sm:$0xff]  ;;  %v795_v32 = vpop.permute.xlu0 %794 }
 0x126   : > { %v1313_v51 = vpack.c.bf16 %v703_v49, %v702_v50  ;;  %v790_v25 = vpop.permute.xlu1 %789 }
 0x128   : > { %1314 = vmatpush1.bf16.msra.mxu0 %v1313_v51  ;;  %1338 = vmatpush1.bf16.msra.mxu1 %v1313_v51 }
 0x129   : > { %v805_v50 = vpop.permute.xlu0 %804 }
 0x12a   : > { %v800_v41 = vpop.permute.xlu1 %799 }
 0x12b   : > { %946 = vmatmul.mubr.f32.vlgmr.msra.gmra.mrb[24].mxu0 %v704_v52  ;;  %981 = vmatmul.mubr.f32.vlgmr.msra.gmra.mrb[0].mxu1 %v718_v53 }
 0x12c   : > { %1185 = vmatprep.mubr.msk.f32.mxu0 %vm832_vm4, %v707_v54  ;;  %1192 = vmatprep.mubr.msk.f32.mxu1 %vm832_vm4, %v721_v55 }
 0x12f   : > { %951 = vmatmul.mubr.f32.gmra.mrb[26].mxu0 %v706_v4  ;;  %986 = vmatmul.mubr.f32.gmra.mrb[2].mxu1 %v720_v56 }
 0x130   : > { %1186 = vmatprep.mubr.msk.f32.mxu0 %vm832_vm4, %v709_v57  ;;  %1193 = vmatprep.mubr.msk.f32.mxu1 %vm832_vm4, %v723_v58  ;;  %v810_v58 = vpop.permute.xlu1 %809 }
 0x133   : > { %956 = vmatmul.mubr.f32.gmra.mrb[28].mxu0 %v708_v59  ;;  %991 = vmatmul.mubr.f32.gmra.mrb[4].mxu1 %v722_v60 }
 0x134   : > { %1187 = vmatprep.mubr.msk.f32.mxu0 %vm832_vm4, %v711_v61  ;;  %1194 = vmatprep.mubr.msk.f32.mxu1 %vm832_vm4, %v725_v62 }
 0x137   : > { %961 = vmatmul.mubr.f32.gmra.mrb[30].mxu0 %v710_v63  ;;  %996 = vmatmul.mubr.f32.gmra.mrb[6].mxu1 %v724_v0 }
 0x138   : > { %1188 = vmatprep.mubr.msk.f32.mxu0 %vm832_vm4, %v713_v1  ;;  %1195 = vmatprep.mubr.msk.f32.mxu1 %vm832_vm4, %v727_v2 }
 0x13b   : > { %966 = vmatmul.mubr.f32.gmra.mrb[32].mxu0 %v712_v3  ;;  %1001 = vmatmul.mubr.f32.gmra.mrb[8].mxu1 %v726_v5  ;;  %v815_v3 = vpop.permute.xlu0 %814 }
 0x13c   : > { %1189 = vmatprep.mubr.msk.f32.mxu0 %vm832_vm4, %v715_v6  ;;  %1196 = vmatprep.mubr.msk.f32.mxu1 %vm832_vm4, %v729_v7 }
 0x13f   : > { %971 = vmatmul.mubr.f32.gmra.mrb[34].mxu0 %v714_v8  ;;  %1006 = vmatmul.mubr.f32.gmra.mrb[10].mxu1 %v728_v9 }
 0x140   : > { %1190 = vmatprep.mubr.msk.f32.mxu0 %vm832_vm4, %v717_v10  ;;  %1197 = vmatprep.mubr.msk.f32.mxu1 %vm832_vm4, %v731_v11 }
 0x143   : > { %976 = vmatmul.mubr.f32.gmra.mrb[36].mxu0 %v716_v12  ;;  %1011 = vmatmul.mubr.f32.gmra.mrb[12].mxu1 %v730_v13  ;;  %v820_v13 = vpop.permute.xlu1 %819 }
 0x144   : > { %1198 = vmatprep.mubr.msk.f32.mxu1 %vm832_vm4, %v733_v14 }
 0x147   : > { %1016 = vmatmul.mubr.f32.gmra.mrb[14].mxu1 %v732_v15 }
 0x148   : > { %1199 = vmatprep.mubr.msk.f32.mxu1 %vm832_vm4, %v735_v16 }
 0x14b   : > { %1021 = vmatmul.mubr.f32.gmra.mrb[16].mxu1 %v734_v17 }
 0x1fe   : > { %v947_v26 = vpop.f32.mrb[24].mxu0  ;;  %v982_v27 = vpop.f32.mrb[0].mxu1 }
 0x1ff   : > { %v948_v28 = vadd.f32 %v947_v26, %v755_v18  ;;  %v983_v29 = vadd.f32 %v982_v27, %v790_v25  ;;  %v984_v30 = vpop.f32.mrb[1].mxu1  ;;  %v949_v31 = vpop.f32.mrb[25].mxu0 }
 0x200   : > { %v825_v25 = vpop.permute.xlu0 %824  ;;  %v830_v30 = vpop.permute.xlu1 %829 }
 0x201   : > { %v1026_v33 = vmax.f32 %v948_v28, 0.0  ;;  %v1033_v34 = vmax.f32 %v983_v29, 0.0 }
 0x202   : > { %v952_v35 = vpop.f32.mrb[26].mxu0  ;;  %v987_v36 = vpop.f32.mrb[2].mxu1 }
 0x203   : > { %1042 = vst [vmem:[%s1936_s11] sm:$0xff] %v1026_v33  ;;  %1049 = vst [vmem:[%s1936_s11 + $0x38] sm:$0xff] %v1033_v34  ;;  %v953_v37 = vadd.f32 %v952_v35, %v760_v19  ;;  %v988_v38 = vadd.f32 %v987_v36, %v795_v32  ;;  %v989_v39 = vpop.f32.mrb[3].mxu1  ;;  %v954_v40 = vpop.f32.mrb[27].mxu0 }
 0x205   : > { %v1027_v42 = vmax.f32 %v953_v37, 0.0  ;;  %v1034_v43 = vmax.f32 %v988_v38, 0.0 }
 0x206   : > { %v957_v44 = vpop.f32.mrb[28].mxu0  ;;  %v992_v45 = vpop.f32.mrb[4].mxu1 }
 0x207   : > { %1043 = vst [vmem:[%s1936_s11 + $0x8] sm:$0xff] %v1027_v42  ;;  %1050 = vst [vmem:[%s1936_s11 + $0x40] sm:$0xff] %v1034_v43  ;;  %v958_v46 = vadd.f32 %v957_v44, %v765_v20  ;;  %v993_v47 = vadd.f32 %v992_v45, %v800_v41  ;;  %v994_v48 = vpop.f32.mrb[5].mxu1  ;;  %v959_v49 = vpop.f32.mrb[29].mxu0 }
 0x209   : > { %v1028_v51 = vmax.f32 %v958_v46, 0.0  ;;  %v1035_v52 = vmax.f32 %v993_v47, 0.0 }
 0x20a   : > { %v962_v53 = vpop.f32.mrb[30].mxu0  ;;  %v997_v54 = vpop.f32.mrb[6].mxu1 }
 0x20b   : > { %1044 = vst [vmem:[%s1936_s11 + $0x10] sm:$0xff] %v1028_v51  ;;  %1051 = vst [vmem:[%s1936_s11 + $0x48] sm:$0xff] %v1035_v52  ;;  %v963_v55 = vadd.f32 %v962_v53, %v770_v21  ;;  %v998_v4 = vadd.f32 %v997_v54, %v805_v50  ;;  %v999_v56 = vpop.f32.mrb[7].mxu1  ;;  %v964_v57 = vpop.f32.mrb[31].mxu0 }
 0x20d   : > { %v1029_v59 = vmax.f32 %v963_v55, 0.0  ;;  %v1036_v60 = vmax.f32 %v998_v4, 0.0 }
 0x20e   : > { %v967_v61 = vpop.f32.mrb[32].mxu0  ;;  %v1002_v62 = vpop.f32.mrb[8].mxu1 }
 0x20f   : > { %1045 = vst [vmem:[%s1936_s11 + $0x18] sm:$0xff] %v1029_v59  ;;  %1052 = vst [vmem:[%s1936_s11 + $0x50] sm:$0xff] %v1036_v60  ;;  %v968_v63 = vadd.f32 %v967_v61, %v775_v22  ;;  %v1003_v0 = vadd.f32 %v1002_v62, %v810_v58  ;;  %v1004_v1 = vpop.f32.mrb[9].mxu1  ;;  %v969_v2 = vpop.f32.mrb[33].mxu0 }
 0x211   : > { %v1030_v5 = vmax.f32 %v968_v63, 0.0  ;;  %v1037_v6 = vmax.f32 %v1003_v0, 0.0 }
 0x212   : > { %v972_v7 = vpop.f32.mrb[34].mxu0  ;;  %v1007_v8 = vpop.f32.mrb[10].mxu1 }
 0x213   : > { %1046 = vst [vmem:[%s1936_s11 + $0x20] sm:$0xff] %v1030_v5  ;;  %1053 = vst [vmem:[%s1936_s11 + $0x58] sm:$0xff] %v1037_v6  ;;  %v973_v9 = vadd.f32 %v972_v7, %v1929_v23  ;;  %v1008_v10 = vadd.f32 %v1007_v8, %v815_v3  ;;  %v1009_v11 = vpop.f32.mrb[11].mxu1  ;;  %v974_v12 = vpop.f32.mrb[35].mxu0 }
 0x215   : > { %v1031_v14 = vmax.f32 %v973_v9, 0.0  ;;  %v1038_v15 = vmax.f32 %v1008_v10, 0.0 }
 0x216   : > { %v977_v16 = vpop.f32.mrb[36].mxu0  ;;  %v1012_v17 = vpop.f32.mrb[12].mxu1 }
 0x217   : > { %1047 = vst [vmem:[%s1936_s11 + $0x28] sm:$0xff] %v1031_v14  ;;  %1054 = vst [vmem:[%s1936_s11 + $0x60] sm:$0xff] %v1038_v15  ;;  %v978_v18 = vadd.f32 %v977_v16, %v1932_v24  ;;  %v1013_v19 = vadd.f32 %v1012_v17, %v820_v13  ;;  %v1014_v20 = vpop.f32.mrb[13].mxu1  ;;  %v979_v21 = vpop.f32.mrb[37].mxu0 }
 0x219   : > { %v1032_v22 = vmax.f32 %v978_v18, 0.0  ;;  %v1039_v23 = vmax.f32 %v1013_v19, 0.0 }
 0x21a   : > { %v1017_v26 = vpop.f32.mrb[14].mxu1 }
 0x21b   : > { %1048 = vst [vmem:[%s1936_s11 + $0x30] sm:$0xff] %v1032_v22  ;;  %1055 = vst [vmem:[%s1936_s11 + $0x68] sm:$0xff] %v1039_v23  ;;  %v1018_v27 = vadd.f32 %v1017_v26, %v825_v25  ;;  %v1019_v28 = vpop.f32.mrb[15].mxu1 }
 0x21d   : > { %v1040_v29 = vmax.f32 %v1018_v27, 0.0 }
 0x21e   : > { %v1022_v24 = vpop.f32.mrb[16].mxu1 }
 0x21f   : > { %1056 = vst [vmem:[%s1936_s11 + $0x70] sm:$0xff] %v1040_v29  ;;  %v1023_v31 = vadd.f32 %v1022_v24, %v830_v30  ;;  %v1024_v32 = vpop.f32.mrb[17].mxu1 }
 0x221   : > { %v1041_v33 = vmax.f32 %v1023_v31, 0.0 }
 0x223   : > { %1057 = vst [vmem:[%s1936_s11 + $0x78] sm:$0xff] %v1041_v33 }
 0x224   : > { %1414 = shalt.err (!%p1411_p5)
}
 0x225   : > { %s1415_s29 = scalar_lea.hbm %s1960_s16, 2048  ;;  %s1419_s9 = scalar_lea.hbm %s2018_s5, 4096 }
 0x226   : > { %p1416_p6 = scmp.ne.s32.totalorder %s1960_s16, %s1415_s29  ;;  %p1420_p10 = scmp.lt.u32.totalorder %s1960_s16, %s2018_s5 }
 0x227   : > { %p1421_p11 = scmp.lt.u32.totalorder %s1419_s9, %s1415_s29  ;;  %p1423_p13 = scmp.lt.u32.totalorder %s1415_s29, %s1960_s16 }
 0x228   : > { %p1417_p7 = pnand %p1416_p6, %p1557_p4 }
 0x229   : > { %p1422_p12 = por %p1421_p11, %p1420_p10 }
 0x22a   : > { %p1418_p9 = pneg %p1417_p7 }
 0x22b   : > { %p1424_p0 = por %p1423_p13, %p1422_p12 }
 0x22d   : > { %p1425_p1 = pnand %p1424_p0, %p1418_p9 }
 0x22f   : > { %1428 = shalt.err (!%p1425_p1)
}
 0x230   : > { %s1485_s12 = smov 128   ;;  %s1486_s14 = smov 8  }
 0x231   : > { %1339 = dma.vmem_to_hbm [thread:$0]  (%p1557_p4), %s1962_s13, 2048, %s1960_s16, %s1967_s21, %s1485_s12, %s1485_s12, %s1486_s14  }
 0x232 PF: > { %p1345_p2 = scmp.ge.s32.totalorder %s1479_s23, 2  ;;  %s1088_s15 = sand.u32 1, %s1459_s18  }
 0x233   : > { %s1089_s17 = scalar_lea.sflag [#allocation3], %s1088_s15 }
 0x234   : > { %p1342_p3 = pnand %p1345_p2, %p1564_p8 }
 0x236   : > { %1454 = dma.done.wait (!%p1342_p3), %s1089_s17, 2048  }
 0x237   : > { %1456 = vsyncadd (!%p1342_p3), %s1089_s17, 4294965248  ;;  %s18_s23 = sadd.s32 1, %s1479_s23   ;;  %s2021_s18 = smov %s1463_s19 }
 0x238   : > { %p15_p5 = scmp.ge.s32.totalorder %s18_s23, 4   ;;  %s2022_s19 = smov %s1467_s20 }
 0x239   : > { %s2023_s20 = smov %s1570_s6  ;;  %s2024_s21 = smov %s1475_s22 }
 0x23a   : > { %s2025_s22 = smov %s2027_s26  ;;  %17 = sbr.rel (!%p15_p5) target bundleno = 4 (0x4), region = 75 }
 0x241   :  { %1094 = vsyncpa [#allocation3], 1 }
 0x242   :  { %1096 = vsyncpa [#allocation3 + $0x1], 1 }

</bundles_post_ra>
